<compile_context>
chip_gen: v7x
topology: tpu7x:2x2x1
jax: 0.10.0
libtpu: 0.0.40
codegen_flags: <defaults>
</compile_context>

<pallas_src>
import functools

import jax
import jax.numpy as jnp
from jax.experimental import pallas as pl
from jax.experimental.pallas import tpu as pltpu


# ---------------------------------------------------------------------------
# Kernel 1: one-shot global encoder MLP on the per-batch region means
# ---------------------------------------------------------------------------

def _global_encoder_kernel(rm_ref, ew1_ref, eb1_ref, ew2_ref, eb2_ref, out_ref):
    f32 = jnp.float32
    bf16 = jnp.bfloat16
    g = jnp.dot(rm_ref[...].astype(bf16), ew1_ref[...],
                preferred_element_type=f32) + eb1_ref[...]
    g = jnp.maximum(g, 0.0)                      # ReLU (Dropout = identity in eval)
    out_ref[...] = jnp.dot(g.astype(bf16), ew2_ref[...],
                           preferred_element_type=f32) + eb2_ref[...]


# ---------------------------------------------------------------------------
# Kernel 2: row-tiled fused heads (node_selector + strategy_generator + LayerNorm)
# ---------------------------------------------------------------------------

def _heads_kernel(strategy_dim,
                  bemb_ref, ctx_ref,
                  w1n_ref, w1c_ref, b1_ref,
                  w2_ref, b2_ref,
                  w3_ref, b3_ref,
                  lng_ref, lnb_ref,
                  out_ref):
    f32 = jnp.float32
    bf16 = jnp.bfloat16
    S = strategy_dim

    # Fused first layer of both heads; split-W1 avoids concat([emb, ctx]).
    h1 = (jnp.dot(bemb_ref[...], w1n_ref[...], preferred_element_type=f32)
          + jnp.dot(ctx_ref[...], w1c_ref[...], preferred_element_type=f32)
          + b1_ref[...])
    h1 = jnp.maximum(h1, 0.0)                                      # (T, 2H)

    # Block-diagonal second layer (both heads in one pass; no sub-lane slices of h1).
    h2 = jnp.maximum(
        jnp.dot(h1.astype(bf16), w2_ref[...], preferred_element_type=f32) + b2_ref[...],
        0.0)                                                       # (T, 2*(H//2))

    # Block-diagonal third layer -> one lane-dense slab: [strategy | logit | zero pad].
    raw = jnp.dot(h2.astype(bf16), w3_ref[...],
                  preferred_element_type=f32) + b3_ref[...]        # (T, OUT_W)

    # LayerNorm over the first S (strategy) columns only, via lane mask (f32, eps=1e-5).
    col = jax.lax.broadcasted_iota(jnp.int32, raw.shape, 1)
    smask = (col < S).astype(f32)
    inv_s = 1.0 / S
    mean = jnp.sum(raw * smask, axis=-1, keepdims=True) * inv_s
    centered = raw - mean
    var = jnp.sum(jnp.square(centered) * smask, axis=-1, keepdims=True) * inv_s
    ln = centered * jax.lax.rsqrt(var + 1e-5) * lng_ref[...] + lnb_ref[...]

    # Strategy columns get the LayerNorm result; logit column (and zero padding) pass raw.
    out_ref[...] = jnp.where(col < S, ln, raw)


# ---------------------------------------------------------------------------
# Parameter construction + kernel-ready preparation
# ---------------------------------------------------------------------------

def _xavier_uniform(key, fan_in, fan_out):
    limit = (6.0 / (fan_in + fan_out)) ** 0.5
    return jax.random.uniform(key, (fan_in, fan_out), jnp.float32, -limit, limit)


def init_params(key, node_dim, region_dim, strategy_dim, hidden_dim):
    d_in = node_dim + region_dim
    h2 = hidden_dim // 2
    ks = jax.random.split(key, 8)
    z = lambda n: jnp.zeros((1, n), jnp.float32)
    return {
        # node_selector
        "sel_w1": _xavier_uniform(ks[0], d_in, hidden_dim), "sel_b1": z(hidden_dim),
        "sel_w2": _xavier_uniform(ks[1], hidden_dim, h2),   "sel_b2": z(h2),
        "sel_w3": _xavier_uniform(ks[2], h2, 1),            "sel_b3": z(1),
        # strategy_generator
        "gen_w1": _xavier_uniform(ks[3], d_in, hidden_dim), "gen_b1": z(hidden_dim),
        "gen_w2": _xavier_uniform(ks[4], hidden_dim, h2),   "gen_b2": z(h2),
        "gen_w3": _xavier_uniform(ks[5], h2, strategy_dim), "gen_b3": z(strategy_dim),
        "ln_gamma": jnp.ones((1, strategy_dim), jnp.float32),
        "ln_beta": jnp.zeros((1, strategy_dim), jnp.float32),
        # global_encoder
        "glob_w1": _xavier_uniform(ks[6], region_dim, hidden_dim), "glob_b1": z(hidden_dim),
        "glob_w2": _xavier_uniform(ks[7], hidden_dim, region_dim), "glob_b2": z(region_dim),
    }


def prepare_params(params, node_dim):
    """One-time weight prep: split/fuse first layers, block-diagonalize the head tails,
    pack [strategy | logit] into a lane-padded slab, pre-cast matmul weights to bf16."""
    bf16 = jnp.bfloat16
    HD = params["sel_w1"].shape[1]          # hidden_dim
    h2 = params["sel_w2"].shape[1]          # hidden_dim // 2
    S = params["gen_w3"].shape[1]           # strategy_vector_dim
    out_w = -(-(S + 1) // 128) * 128        # lane-dense output slab width

    # Fused first layer, split into node-part and context-part (cols: [sel | gen]).
    w1n = jnp.concatenate([params["sel_w1"][:node_dim],
                           params["gen_w1"][:node_dim]], axis=1)
    w1c = jnp.concatenate([params["sel_w1"][node_dim:],
                           params["gen_w1"][node_dim:]], axis=1)
    b1 = jnp.concatenate([params["sel_b1"], params["gen_b1"]], axis=1)

    # Block-diagonal second layer: rows [0,HD)=sel, [HD,2HD)=gen; cols [0,h2)=sel, [h2,2h2)=gen.
    w2 = jnp.zeros((2 * HD, 2 * h2), jnp.float32)
    w2 = w2.at[:HD, :h2].set(params["sel_w2"]).at[HD:, h2:].set(params["gen_w2"])
    b2 = jnp.concatenate([params["sel_b2"], params["gen_b2"]], axis=1)

    # Block-diagonal third layer into the packed slab: cols [0,S)=strategy, col S=logit.
    w3 = jnp.zeros((2 * h2, out_w), jnp.float32)
    w3 = w3.at[h2:, :S].set(params["gen_w3"]).at[:h2, S].set(params["sel_w3"][:, 0])
    b3 = jnp.zeros((1, out_w), jnp.float32)
    b3 = b3.at[:, :S].set(params["gen_b3"]).at[:, S].set(params["sel_b3"][:, 0])

    # LayerNorm affine, padded to slab width (padding columns are masked in-kernel).
    lng = jnp.zeros((1, out_w), jnp.float32).at[:, :S].set(params["ln_gamma"])
    lnb = jnp.zeros((1, out_w), jnp.float32).at[:, :S].set(params["ln_beta"])

    return {
        # global_encoder
        "ew1": params["glob_w1"].astype(bf16), "eb1": params["glob_b1"],
        "ew2": params["glob_w2"].astype(bf16), "eb2": params["glob_b2"],
        # fused heads
        "w1n": w1n.astype(bf16), "w1c": w1c.astype(bf16), "b1": b1,
        "w2": w2.astype(bf16), "b2": b2,
        "w3": w3.astype(bf16), "b3": b3,
        "lng": lng, "lnb": lnb,
    }


# ---------------------------------------------------------------------------
# Forward pass
# ---------------------------------------------------------------------------

def enhanced_actor_forward(prep, node_embeddings, region_embeddings,
                           node_batch_idx, region_batch_idx, boundary_nodes,
                           num_batches, strategy_dim):
    S = strategy_dim
    if region_embeddings.shape[0] == 0 or boundary_nodes.shape[0] == 0:
        return (jnp.zeros((0,), jnp.float32), jnp.zeros((0, S), jnp.float32))

    f32, bf16 = jnp.float32, jnp.bfloat16
    NB = boundary_nodes.shape[0]
    node_dim = node_embeddings.shape[1]
    region_dim = region_embeddings.shape[1]
    B = num_batches
    OUT_W = prep["w3"].shape[1]
    vmem_bytes = 32 * 1024 * 1024

    # ---- scatter_mean over regions: exact f32 segment-sum in XLA (tiny, data-dependent) ----
    sums = jax.ops.segment_sum(region_embeddings, region_batch_idx, num_segments=B)
    counts = jax.ops.segment_sum(jnp.ones((region_embeddings.shape[0],), f32),
                                 region_batch_idx, num_segments=B)
    region_mean = sums / jnp.maximum(counts, 1.0)[:, None]                 # (B, R)
    B_pad = -(-B // 8) * 8
    if B_pad != B:
        region_mean = jnp.pad(region_mean, ((0, B_pad - B), (0, 0)))

    # ---- global_encoder MLP: ONE small pallas_call (computed once, not per row tile) ----
    ctx_all = pl.pallas_call(
        _global_encoder_kernel,
        grid=(1,),
        in_specs=[pl.BlockSpec(region_mean.shape, lambda i: (0, 0)),
                  pl.BlockSpec(prep["ew1"].shape, lambda i: (0, 0)),
                  pl.BlockSpec(prep["eb1"].shape, lambda i: (0, 0)),
                  pl.BlockSpec(prep["ew2"].shape, lambda i: (0, 0)),
                  pl.BlockSpec(prep["eb2"].shape, lambda i: (0, 0))],
        out_specs=pl.BlockSpec((B_pad, region_dim), lambda i: (0, 0)),
        out_shape=jax.ShapeDtypeStruct((B_pad, region_dim), f32),
        compiler_params=pltpu.CompilerParams(vmem_limit_bytes=vmem_bytes),
    )(region_mean, prep["ew1"], prep["eb1"], prep["ew2"], prep["eb2"])      # (B_pad, R)

    # ---- row tiling: big tiles (<=512), but >=2 grid steps when possible so the
    #      "parallel" row axis shards across both v7x TensorCores ----
    MAX_ROW_TILE = 512
    half = -(-NB // 2)
    row_tile = min(MAX_ROW_TILE, max(8, -(-half // 8) * 8))
    nb_pad = -(-NB // row_tile) * row_tile
    grid_rows = nb_pad // row_tile

    bnodes = boundary_nodes
    if nb_pad != NB:
        bnodes = jnp.concatenate(
            [boundary_nodes, jnp.zeros((nb_pad - NB,), boundary_nodes.dtype)])

    # Data-dependent row gathers stay in XLA; streamed operands are pre-cast to bf16
    # so the per-tile HBM->VMEM traffic is halved and the kernel does no input casts.
    bemb = node_embeddings[bnodes].astype(bf16)                     # (nb_pad, node_dim)
    bbi = node_batch_idx[bnodes]
    ctx = ctx_all[bbi].astype(bf16)                                 # (nb_pad, region_dim)
    # NOTE: the PyTorch pad/truncate-to-in_features branch is statically a no-op here
    # since node_dim + region_dim == in_features by construction.

    weights = (prep["w1n"], prep["w1c"], prep["b1"],
               prep["w2"], prep["b2"],
               prep["w3"], prep["b3"],
               prep["lng"], prep["lnb"])

    def rep(a):
        nd = a.ndim
        return pl.BlockSpec(a.shape, lambda i: (0,) * nd)   # resident, same block per step

    out = pl.pallas_call(
        functools.partial(_heads_kernel, S),
        grid=(grid_rows,),
        in_specs=([pl.BlockSpec((row_tile, node_dim), lambda i: (i, 0)),
                   pl.BlockSpec((row_tile, region_dim), lambda i: (i, 0))]
                  + [rep(w) for w in weights]),
        out_specs=pl.BlockSpec((row_tile, OUT_W), lambda i: (i, 0)),
        out_shape=jax.ShapeDtypeStruct((nb_pad, OUT_W), jnp.float32),
        compiler_params=pltpu.CompilerParams(
            dimension_semantics=("parallel",),
            vmem_limit_bytes=vmem_bytes),
    )(bemb, ctx, *weights)

    # Slab layout: [:, :S] = strategy (LayerNorm'ed), [:, S] = node logit.
    return out[:NB, S], out[:NB, :S]


# ---------------------------------------------------------------------------
# Pure-JAX reference with the same precision policy (for self-check)
# ---------------------------------------------------------------------------

def _ref_forward(params, node_embeddings, region_embeddings, node_batch_idx,
                 region_batch_idx, boundary_nodes, num_batches):
    f32, bf16 = jnp.float32, jnp.bfloat16

    def lin(x, w, b):
        return jnp.dot(x.astype(bf16), w.astype(bf16),
                       preferred_element_type=f32) + b

    sums = jax.ops.segment_sum(region_embeddings, region_batch_idx,
                               num_segments=num_batches)
    counts = jax.ops.segment_sum(jnp.ones((region_embeddings.shape[0],), f32),
                                 region_batch_idx, num_segments=num_batches)
    region_mean = sums / jnp.maximum(counts, 1.0)[:, None]

    g = jnp.maximum(lin(region_mean, params["glob_w1"], params["glob_b1"]), 0.0)
    ctx_all = lin(g, params["glob_w2"], params["glob_b2"])

    ctx = ctx_all[node_batch_idx[boundary_nodes]]
    bemb = node_embeddings[boundary_nodes]
    comb = jnp.concatenate([bemb, ctx], axis=1)

    hs = jnp.maximum(lin(comb, params["sel_w1"], params["sel_b1"]), 0.0)
    hs = jnp.maximum(lin(hs, params["sel_w2"], params["sel_b2"]), 0.0)
    logit = lin(hs, params["sel_w3"], params["sel_b3"])

    ht = jnp.maximum(lin(comb, params["gen_w1"], params["gen_b1"]), 0.0)
    ht = jnp.maximum(lin(ht, params["gen_w2"], params["gen_b2"]), 0.0)
    sraw = lin(ht, params["gen_w3"], params["gen_b3"])
    mean = jnp.mean(sraw, axis=-1, keepdims=True)
    var = jnp.mean(jnp.square(sraw - mean), axis=-1, keepdims=True)
    snorm = (sraw - mean) * jax.lax.rsqrt(var + 1e-5)
    return logit[:, 0], snorm * params["ln_gamma"] + params["ln_beta"]


# ---------------------------------------------------------------------------
# Demo
# ---------------------------------------------------------------------------

if __name__ == "__main__":
    node_dim = 16
    region_dim = 16
    hidden_dim = 32
    strategy_dim = 32
    num_batches = 2
    num_nodes = 12
    num_regions = 5
    num_boundary = 6

    key = jax.random.PRNGKey(0)
    k_param, k_node, k_region = jax.random.split(key, 3)

    params = init_params(k_param, node_dim, region_dim, strategy_dim, hidden_dim)
    prep = prepare_params(params, node_dim)

    node_embeddings = jax.random.normal(k_node, (num_nodes, node_dim), jnp.float32)
    region_embeddings = jax.random.normal(k_region, (num_regions, region_dim), jnp.float32)
    node_batch_idx = jnp.array([0, 0, 0, 0, 0, 0, 1, 1, 1, 1, 1, 1], jnp.int32)
    region_batch_idx = jnp.array([0, 0, 0, 1, 1], jnp.int32)
    boundary_nodes = jnp.array([1, 3, 5, 6, 8, 11], jnp.int32)

    fwd = jax.jit(enhanced_actor_forward, static_argnums=(6, 7))
    node_logits, strategy_vectors = fwd(
        prep, node_embeddings, region_embeddings,
        node_batch_idx, region_batch_idx, boundary_nodes,
        num_batches, strategy_dim)
    jax.block_until_ready((node_logits, strategy_vectors))

    assert node_logits.shape == (num_boundary,)
    assert strategy_vectors.shape == (num_boundary, strategy_dim)

    ref_logits, ref_strat = _ref_forward(
        params, node_embeddings, region_embeddings,
        node_batch_idx, region_batch_idx, boundary_nodes, num_batches)
    assert jnp.allclose(node_logits, ref_logits, atol=2e-2, rtol=2e-2)
    assert jnp.allclose(strategy_vectors, ref_strat, atol=2e-2, rtol=2e-2)

    print("KERNEL_OK")
</pallas_src>

<mosaic_0001>
module attributes {stable_mosaic.version = 11 : i64} {
  func.func @_global_encoder_kernel(%arg0: i32, %arg1: memref<8x16xf32, #tpu.memory_space<vmem>>, %arg2: memref<16x32xbf16, #tpu.memory_space<vmem>>, %arg3: memref<1x32xf32, #tpu.memory_space<vmem>>, %arg4: memref<32x16xbf16, #tpu.memory_space<vmem>>, %arg5: memref<1x16xf32, #tpu.memory_space<vmem>>, %arg6: memref<8x16xf32, #tpu.memory_space<vmem>>) attributes {dimension_semantics = [#tpu.dimension_semantics<arbitrary>], iteration_bounds = array<i64: 1>, scalar_prefetch = 0 : i64, scratch_operands = 0 : i64, tpu.core_type = #tpu.core_type<tc>, window_params = [{pipeline_mode = #tpu.pipeline_mode<synchronous>, transform_indices = @transform_0, window_bounds = array<i64: 8, 16>}, {pipeline_mode = #tpu.pipeline_mode<synchronous>, transform_indices = @transform_1, window_bounds = array<i64: 16, 32>}, {pipeline_mode = #tpu.pipeline_mode<synchronous>, transform_indices = @transform_2, window_bounds = array<i64: 1, 32>}, {pipeline_mode = #tpu.pipeline_mode<synchronous>, transform_indices = @transform_3, window_bounds = array<i64: 32, 16>}, {pipeline_mode = #tpu.pipeline_mode<synchronous>, transform_indices = @transform_4, window_bounds = array<i64: 1, 16>}, {pipeline_mode = #tpu.pipeline_mode<synchronous>, transform_indices = @transform_5, window_bounds = array<i64: 8, 16>}]} {
    %c0 = arith.constant 0 : index
    %c0_0 = arith.constant 0 : index
    %0 = vector.load %arg1[%c0, %c0_0] : memref<8x16xf32, #tpu.memory_space<vmem>>, vector<8x16xf32>
    %1 = arith.truncf %0 : vector<8x16xf32> to vector<8x16xbf16>
    %c0_1 = arith.constant 0 : index
    %c0_2 = arith.constant 0 : index
    %2 = vector.load %arg2[%c0_1, %c0_2] : memref<16x32xbf16, #tpu.memory_space<vmem>>, vector<16x32xbf16>
    %cst = arith.constant dense<0.000000e+00> : vector<8x32xf32>
    %3 = tpu.matmul %1, %2, %cst {dimension_numbers = #tpu.dot_dimension_numbers<[1], [0], [0], [1], [0, 0, 1, 1], [], []>} : vector<8x16xbf16>, vector<16x32xbf16>, vector<8x32xf32> -> vector<8x32xf32>
    %c0_3 = arith.constant 0 : index
    %c0_4 = arith.constant 0 : index
    %4 = vector.load %arg3[%c0_3, %c0_4] : memref<1x32xf32, #tpu.memory_space<vmem>>, vector<1x32xf32>
    %5 = vector.broadcast %4 : vector<1x32xf32> to vector<8x32xf32>
    %6 = arith.addf %3, %5 : vector<8x32xf32>
    %cst_5 = arith.constant 0.000000e+00 : f32
    %7 = vector.broadcast %cst_5 : f32 to vector<8x32xf32>
    %8 = arith.maximumf %6, %7 : vector<8x32xf32>
    %9 = arith.truncf %8 : vector<8x32xf32> to vector<8x32xbf16>
    %c0_6 = arith.constant 0 : index
    %c0_7 = arith.constant 0 : index
    %10 = vector.load %arg4[%c0_6, %c0_7] : memref<32x16xbf16, #tpu.memory_space<vmem>>, vector<32x16xbf16>
    %cst_8 = arith.constant dense<0.000000e+00> : vector<8x16xf32>
    %11 = tpu.matmul %9, %10, %cst_8 {dimension_numbers = #tpu.dot_dimension_numbers<[1], [0], [0], [1], [0, 0, 1, 1], [], []>} : vector<8x32xbf16>, vector<32x16xbf16>, vector<8x16xf32> -> vector<8x16xf32>
    %c0_9 = arith.constant 0 : index
    %c0_10 = arith.constant 0 : index
    %12 = vector.load %arg5[%c0_9, %c0_10] : memref<1x16xf32, #tpu.memory_space<vmem>>, vector<1x16xf32>
    %13 = vector.broadcast %12 : vector<1x16xf32> to vector<8x16xf32>
    %14 = arith.addf %11, %13 : vector<8x16xf32>
    %c0_11 = arith.constant 0 : index
    %c0_12 = arith.constant 0 : index
    %15 = vector.load %arg6[%c0_11, %c0_12] : memref<8x16xf32, #tpu.memory_space<vmem>>, vector<8x16xf32>
    tpu.vector_store %arg6[%c0_11, %c0_12], %14 {strides = array<i32>} : memref<8x16xf32, #tpu.memory_space<vmem>>, vector<8x16xf32>,
    return
  }
  func.func @transform_0(%arg0: i32) -> (i32, i32) {
    %c0_i32 = arith.constant 0 : i32
    %c0_i32_0 = arith.constant 0 : i32
    %c0_i32_1 = arith.constant 0 : i32
    return %c0_i32, %c0_i32_0 : i32, i32
  }
  func.func @transform_1(%arg0: i32) -> (i32, i32) {
    %c0_i32 = arith.constant 0 : i32
    %c0_i32_0 = arith.constant 0 : i32
    %c0_i32_1 = arith.constant 0 : i32
    return %c0_i32, %c0_i32_0 : i32, i32
  }
  func.func @transform_2(%arg0: i32) -> (i32, i32) {
    %c0_i32 = arith.constant 0 : i32
    %c0_i32_0 = arith.constant 0 : i32
    %c0_i32_1 = arith.constant 0 : i32
    return %c0_i32, %c0_i32_0 : i32, i32
  }
  func.func @transform_3(%arg0: i32) -> (i32, i32) {
    %c0_i32 = arith.constant 0 : i32
    %c0_i32_0 = arith.constant 0 : i32
    %c0_i32_1 = arith.constant 0 : i32
    return %c0_i32, %c0_i32_0 : i32, i32
  }
  func.func @transform_4(%arg0: i32) -> (i32, i32) {
    %c0_i32 = arith.constant 0 : i32
    %c0_i32_0 = arith.constant 0 : i32
    %c0_i32_1 = arith.constant 0 : i32
    return %c0_i32, %c0_i32_0 : i32, i32
  }
  func.func @transform_5(%arg0: i32) -> (i32, i32) {
    %c0_i32 = arith.constant 0 : i32
    %c0_i32_0 = arith.constant 0 : i32
    %c0_i32_1 = arith.constant 0 : i32
    return %c0_i32, %c0_i32_0 : i32, i32
  }
}

module attributes {stable_mosaic.version = 11 : i64} {
  func.func @_heads_kernel(%arg0: i32, %arg1: memref<8x16xbf16, #tpu.memory_space<vmem>>, %arg2: memref<8x16xbf16, #tpu.memory_space<vmem>>, %arg3: memref<16x64xbf16, #tpu.memory_space<vmem>>, %arg4: memref<16x64xbf16, #tpu.memory_space<vmem>>, %arg5: memref<1x64xf32, #tpu.memory_space<vmem>>, %arg6: memref<64x32xbf16, #tpu.memory_space<vmem>>, %arg7: memref<1x32xf32, #tpu.memory_space<vmem>>, %arg8: memref<32x128xbf16, #tpu.memory_space<vmem>>, %arg9: memref<1x128xf32, #tpu.memory_space<vmem>>, %arg10: memref<1x128xf32, #tpu.memory_space<vmem>>, %arg11: memref<1x128xf32, #tpu.memory_space<vmem>>, %arg12: memref<8x128xf32, #tpu.memory_space<vmem>>) attributes {dimension_semantics = [#tpu.dimension_semantics<parallel>], iteration_bounds = array<i64: 1>, scalar_prefetch = 0 : i64, scratch_operands = 0 : i64, tpu.core_type = #tpu.core_type<tc>, window_params = [{transform_indices = @transform_0, window_bounds = array<i64: 8, 16>}, {transform_indices = @transform_1, window_bounds = array<i64: 8, 16>}, {pipeline_mode = #tpu.pipeline_mode<synchronous>, transform_indices = @transform_2, window_bounds = array<i64: 16, 64>}, {pipeline_mode = #tpu.pipeline_mode<synchronous>, transform_indices = @transform_3, window_bounds = array<i64: 16, 64>}, {pipeline_mode = #tpu.pipeline_mode<synchronous>, transform_indices = @transform_4, window_bounds = array<i64: 1, 64>}, {pipeline_mode = #tpu.pipeline_mode<synchronous>, transform_indices = @transform_5, window_bounds = array<i64: 64, 32>}, {pipeline_mode = #tpu.pipeline_mode<synchronous>, transform_indices = @transform_6, window_bounds = array<i64: 1, 32>}, {pipeline_mode = #tpu.pipeline_mode<synchronous>, transform_indices = @transform_7, window_bounds = array<i64: 32, 128>}, {pipeline_mode = #tpu.pipeline_mode<synchronous>, transform_indices = @transform_8, window_bounds = array<i64: 1, 128>}, {pipeline_mode = #tpu.pipeline_mode<synchronous>, transform_indices = @transform_9, window_bounds = array<i64: 1, 128>}, {pipeline_mode = #tpu.pipeline_mode<synchronous>, transform_indices = @transform_10, window_bounds = array<i64: 1, 128>}, {transform_indices = @transform_11, window_bounds = array<i64: 8, 128>}]} {
    %c0 = arith.constant 0 : index
    %c0_0 = arith.constant 0 : index
    %0 = vector.load %arg1[%c0, %c0_0] : memref<8x16xbf16, #tpu.memory_space<vmem>>, vector<8x16xbf16>
    %c0_1 = arith.constant 0 : index
    %c0_2 = arith.constant 0 : index
    %1 = vector.load %arg3[%c0_1, %c0_2] : memref<16x64xbf16, #tpu.memory_space<vmem>>, vector<16x64xbf16>
    %cst = arith.constant dense<0.000000e+00> : vector<8x64xf32>
    %2 = tpu.matmul %0, %1, %cst {dimension_numbers = #tpu.dot_dimension_numbers<[1], [0], [0], [1], [0, 0, 1, 1], [], []>} : vector<8x16xbf16>, vector<16x64xbf16>, vector<8x64xf32> -> vector<8x64xf32>
    %c0_3 = arith.constant 0 : index
    %c0_4 = arith.constant 0 : index
    %3 = vector.load %arg2[%c0_3, %c0_4] : memref<8x16xbf16, #tpu.memory_space<vmem>>, vector<8x16xbf16>
    %c0_5 = arith.constant 0 : index
    %c0_6 = arith.constant 0 : index
    %4 = vector.load %arg4[%c0_5, %c0_6] : memref<16x64xbf16, #tpu.memory_space<vmem>>, vector<16x64xbf16>
    %cst_7 = arith.constant dense<0.000000e+00> : vector<8x64xf32>
    %5 = tpu.matmul %3, %4, %cst_7 {dimension_numbers = #tpu.dot_dimension_numbers<[1], [0], [0], [1], [0, 0, 1, 1], [], []>} : vector<8x16xbf16>, vector<16x64xbf16>, vector<8x64xf32> -> vector<8x64xf32>
    %6 = arith.addf %2, %5 : vector<8x64xf32>
    %c0_8 = arith.constant 0 : index
    %c0_9 = arith.constant 0 : index
    %7 = vector.load %arg5[%c0_8, %c0_9] : memref<1x64xf32, #tpu.memory_space<vmem>>, vector<1x64xf32>
    %8 = vector.broadcast %7 : vector<1x64xf32> to vector<8x64xf32>
    %9 = arith.addf %6, %8 : vector<8x64xf32>
    %cst_10 = arith.constant 0.000000e+00 : f32
    %10 = vector.broadcast %cst_10 : f32 to vector<8x64xf32>
    %11 = arith.maximumf %9, %10 : vector<8x64xf32>
    %12 = arith.truncf %11 : vector<8x64xf32> to vector<8x64xbf16>
    %c0_11 = arith.constant 0 : index
    %c0_12 = arith.constant 0 : index
    %13 = vector.load %arg6[%c0_11, %c0_12] : memref<64x32xbf16, #tpu.memory_space<vmem>>, vector<64x32xbf16>
    %cst_13 = arith.constant dense<0.000000e+00> : vector<8x32xf32>
    %14 = tpu.matmul %12, %13, %cst_13 {dimension_numbers = #tpu.dot_dimension_numbers<[1], [0], [0], [1], [0, 0, 1, 1], [], []>} : vector<8x64xbf16>, vector<64x32xbf16>, vector<8x32xf32> -> vector<8x32xf32>
    %c0_14 = arith.constant 0 : index
    %c0_15 = arith.constant 0 : index
    %15 = vector.load %arg7[%c0_14, %c0_15] : memref<1x32xf32, #tpu.memory_space<vmem>>, vector<1x32xf32>
    %16 = vector.broadcast %15 : vector<1x32xf32> to vector<8x32xf32>
    %17 = arith.addf %14, %16 : vector<8x32xf32>
    %cst_16 = arith.constant 0.000000e+00 : f32
    %18 = vector.broadcast %cst_16 : f32 to vector<8x32xf32>
    %19 = arith.maximumf %17, %18 : vector<8x32xf32>
    %20 = arith.truncf %19 : vector<8x32xf32> to vector<8x32xbf16>
    %c0_17 = arith.constant 0 : index
    %c0_18 = arith.constant 0 : index
    %21 = vector.load %arg8[%c0_17, %c0_18] : memref<32x128xbf16, #tpu.memory_space<vmem>>, vector<32x128xbf16>
    %cst_19 = arith.constant dense<0.000000e+00> : vector<8x128xf32>
    %22 = tpu.matmul %20, %21, %cst_19 {dimension_numbers = #tpu.dot_dimension_numbers<[1], [0], [0], [1], [0, 0, 1, 1], [], []>} : vector<8x32xbf16>, vector<32x128xbf16>, vector<8x128xf32> -> vector<8x128xf32>
    %c0_20 = arith.constant 0 : index
    %c0_21 = arith.constant 0 : index
    %23 = vector.load %arg9[%c0_20, %c0_21] : memref<1x128xf32, #tpu.memory_space<vmem>>, vector<1x128xf32>
    %24 = vector.broadcast %23 : vector<1x128xf32> to vector<8x128xf32>
    %25 = arith.addf %22, %24 : vector<8x128xf32>
    %26 = tpu.iota {dimensions = array<i32: 1>} : vector<8x128xi32>
    %c32_i32 = arith.constant 32 : i32
    %27 = vector.broadcast %c32_i32 : i32 to vector<8x128xi32>
    %28 = arith.cmpi slt, %26, %27 : vector<8x128xi32>
    %29 = arith.extui %28 : vector<8x128xi1> to vector<8x128xi32>
    %30 = arith.sitofp %29 : vector<8x128xi32> to vector<8x128xf32>
    %31 = arith.mulf %25, %30 : vector<8x128xf32>
    %cst_22 = arith.constant dense<0.000000e+00> : vector<8xf32>
    %32 = vector.multi_reduction <add>, %31, %cst_22 [1] : vector<8x128xf32> to vector<8xf32>
    %33 = vector.shape_cast %32 : vector<8xf32> to vector<8x1xf32>
    %cst_23 = arith.constant 3.125000e-02 : f32
    %34 = vector.broadcast %cst_23 : f32 to vector<8x1xf32>
    %35 = arith.mulf %33, %34 : vector<8x1xf32>
    %36 = vector.broadcast %35 : vector<8x1xf32> to vector<8x128xf32>
    %37 = arith.subf %25, %36 : vector<8x128xf32>
    %38 = arith.mulf %37, %37 : vector<8x128xf32>
    %39 = arith.mulf %38, %30 : vector<8x128xf32>
    %cst_24 = arith.constant dense<0.000000e+00> : vector<8xf32>
    %40 = vector.multi_reduction <add>, %39, %cst_24 [1] : vector<8x128xf32> to vector<8xf32>
    %41 = vector.shape_cast %40 : vector<8xf32> to vector<8x1xf32>
    %cst_25 = arith.constant 3.125000e-02 : f32
    %42 = vector.broadcast %cst_25 : f32 to vector<8x1xf32>
    %43 = arith.mulf %41, %42 : vector<8x1xf32>
    %cst_26 = arith.constant 9.99999974E-6 : f32
    %44 = vector.broadcast %cst_26 : f32 to vector<8x1xf32>
    %45 = arith.addf %43, %44 : vector<8x1xf32>
    %46 = math.rsqrt %45 : vector<8x1xf32>
    %47 = vector.broadcast %46 : vector<8x1xf32> to vector<8x128xf32>
    %48 = arith.mulf %37, %47 : vector<8x128xf32>
    %c0_27 = arith.constant 0 : index
    %c0_28 = arith.constant 0 : index
    %49 = vector.load %arg10[%c0_27, %c0_28] : memref<1x128xf32, #tpu.memory_space<vmem>>, vector<1x128xf32>
    %50 = vector.broadcast %49 : vector<1x128xf32> to vector<8x128xf32>
    %51 = arith.mulf %48, %50 : vector<8x128xf32>
    %c0_29 = arith.constant 0 : index
    %c0_30 = arith.constant 0 : index
    %52 = vector.load %arg11[%c0_29, %c0_30] : memref<1x128xf32, #tpu.memory_space<vmem>>, vector<1x128xf32>
    %53 = vector.broadcast %52 : vector<1x128xf32> to vector<8x128xf32>
    %54 = arith.addf %51, %53 : vector<8x128xf32>
    %c32_i32_31 = arith.constant 32 : i32
    %55 = vector.broadcast %c32_i32_31 : i32 to vector<8x128xi32>
    %56 = arith.cmpi slt, %26, %55 : vector<8x128xi32>
    %57 = arith.select %56, %54, %25 : vector<8x128xi1>, vector<8x128xf32>
    %c0_32 = arith.constant 0 : index
    %c0_33 = arith.constant 0 : index
    %58 = vector.load %arg12[%c0_32, %c0_33] : memref<8x128xf32, #tpu.memory_space<vmem>>, vector<8x128xf32>
    tpu.vector_store %arg12[%c0_32, %c0_33], %57 {strides = array<i32>} : memref<8x128xf32, #tpu.memory_space<vmem>>, vector<8x128xf32>,
    return
  }
  func.func @transform_0(%arg0: i32) -> (i32, i32) {
    %c0_i32 = arith.constant 0 : i32
    %c0_i32_0 = arith.constant 0 : i32
    return %arg0, %c0_i32 : i32, i32
  }
  func.func @transform_1(%arg0: i32) -> (i32, i32) {
    %c0_i32 = arith.constant 0 : i32
    %c0_i32_0 = arith.constant 0 : i32
    return %arg0, %c0_i32 : i32, i32
  }
  func.func @transform_2(%arg0: i32) -> (i32, i32) {
    %c0_i32 = arith.constant 0 : i32
    %c0_i32_0 = arith.constant 0 : i32
    %c0_i32_1 = arith.constant 0 : i32
    return %c0_i32, %c0_i32_0 : i32, i32
  }
  func.func @transform_3(%arg0: i32) -> (i32, i32) {
    %c0_i32 = arith.constant 0 : i32
    %c0_i32_0 = arith.constant 0 : i32
    %c0_i32_1 = arith.constant 0 : i32
    return %c0_i32, %c0_i32_0 : i32, i32
  }
  func.func @transform_4(%arg0: i32) -> (i32, i32) {
    %c0_i32 = arith.constant 0 : i32
    %c0_i32_0 = arith.constant 0 : i32
    %c0_i32_1 = arith.constant 0 : i32
    return %c0_i32, %c0_i32_0 : i32, i32
  }
  func.func @transform_5(%arg0: i32) -> (i32, i32) {
    %c0_i32 = arith.constant 0 : i32
    %c0_i32_0 = arith.constant 0 : i32
    %c0_i32_1 = arith.constant 0 : i32
    return %c0_i32, %c0_i32_0 : i32, i32
  }
  func.func @transform_6(%arg0: i32) -> (i32, i32) {
    %c0_i32 = arith.constant 0 : i32
    %c0_i32_0 = arith.constant 0 : i32
    %c0_i32_1 = arith.constant 0 : i32
    return %c0_i32, %c0_i32_0 : i32, i32
  }
  func.func @transform_7(%arg0: i32) -> (i32, i32) {
    %c0_i32 = arith.constant 0 : i32
    %c0_i32_0 = arith.constant 0 : i32
    %c0_i32_1 = arith.constant 0 : i32
    return %c0_i32, %c0_i32_0 : i32, i32
  }
  func.func @transform_8(%arg0: i32) -> (i32, i32) {
    %c0_i32 = arith.constant 0 : i32
    %c0_i32_0 = arith.constant 0 : i32
    %c0_i32_1 = arith.constant 0 : i32
    return %c0_i32, %c0_i32_0 : i32, i32
  }
  func.func @transform_9(%arg0: i32) -> (i32, i32) {
    %c0_i32 = arith.constant 0 : i32
    %c0_i32_0 = arith.constant 0 : i32
    %c0_i32_1 = arith.constant 0 : i32
    return %c0_i32, %c0_i32_0 : i32, i32
  }
  func.func @transform_10(%arg0: i32) -> (i32, i32) {
    %c0_i32 = arith.constant 0 : i32
    %c0_i32_0 = arith.constant 0 : i32
    %c0_i32_1 = arith.constant 0 : i32
    return %c0_i32, %c0_i32_0 : i32, i32
  }
  func.func @transform_11(%arg0: i32) -> (i32, i32) {
    %c0_i32 = arith.constant 0 : i32
    %c0_i32_0 = arith.constant 0 : i32
    return %arg0, %c0_i32 : i32, i32
  }
}

</mosaic_0001>

<bundles_post_ra>
// kernel: enhanced_actor_forward.2
= control target key start
LH: loop header
LB: loop body
LE: loop exit
PB: predicated region body
PF: predicated region fallthrough
CT: control target
= control target key end

     0   :  { %v187_v0 = vmov 0.0   ;;  %vm188_vm0 = vmmov 0   ;;  %vm38_vm1 = vcmask 130048   ;;  %vm107_vm2 = vcmask 261120   ;;  %s242_s1 = inlined_call_operand.vmem [shape: bf16[16,32], index: 1, kind: input, shape index: {}]   ;;  %s243_s0 = inlined_call_operand.vmem [shape: f32[8,16], index: 0, kind: input, shape index: {}]   ;;  %s244_s3 = inlined_call_operand.vmem [shape: bf16[32,16], index: 3, kind: input, shape index: {}]   ;;  %s245_s2 = inlined_call_operand.vmem [shape: f32[1,32], index: 2, kind: input, shape index: {}]   ;;  %s246_s4 = inlined_call_operand.vmem [shape: f32[1,16], index: 4, kind: input, shape index: {}]   ;;  %s247_s5 = inlined_call_operand.vmem [shape: f32[8,16], index: 5, kind: output, shape index: {}]  }
   0x1   :  { %168 = vmatprep.subr.bf16.mxu0 %v187_v0  ;;  %v184_v1 = vld [vmem:[%s242_s1] sm:$0xff]   ;;  %170 = vmatprep.mubr.msk.bf16.mxu0 %vm188_vm0, %v187_v0  ;;  %v186_v5 = vld [vmem:[%s244_s3 + $0x8] sm:$0xff]  }
   0x2   :  { %v21_v2 = vld [vmem:[%s243_s0] sm:$0xff]  ;;  %174 = vmatprep.subr.bf16.mxu1 %v187_v0  ;;  %178 = vmatprep.mubr.msk.bf16.mxu1 %vm188_vm0, %v187_v0 }
   0x3   :  { %169 = vmatpush3.bf16.msra.mxu0 %v184_v1  ;;  %v22_v3 = vpack.c.bf16 %v21_v2, %v21_v2  ;;  %v185_v4 = vld [vmem:[%s244_s3] sm:$0xff]  }
   0x4   :  { %175 = vmatpush3.bf16.msra.mxu1 %v185_v4  ;;  %v156_v6 = vld [vmem:[%s245_s2] ss:$0 sm:$0xff] }
   0x5   :  { %176 = vmatprep.subr.bf16.mxu1 %v187_v0  ;;  %v159_v14 = vld [vmem:[%s246_s4] ss:$0 sm:$0xff] }
   0x6   :  { %171 = vmatmul.mubr.msk.bf16.vlgmr.msra.gmra.mrb[0].mxu0 %vm38_vm1, %v22_v3 }
   0x8   :  { %177 = vmatpush3.bf16.msra.mxu1 %v186_v5 }
  0xd9   :  { %v76_v7 = vpop.f32.mrb[0].mxu0 }
  0xda   :  { %v77_v8 = vadd.f32 %v156_v6, %v76_v7  ;;  %v172_v9 = vpop.f32.mrb[1].mxu0 }
  0xdb   :  { %v79_v10 = vpop.f32.mrb[2].mxu0 }
  0xdc   :  { %v82_v11 = vmax.f32 %v77_v8, 0.0  ;;  %v173_v12 = vpop.f32.mrb[3].mxu0 }
  0xde   :  { %v83_v13 = vpack.c.bf16 %v82_v11, %v82_v11 }
  0xe0   :  { %179 = vmatmul.mubr.msk.bf16.vlgmr.msra.gmra.mrb[0].mxu1 %vm107_vm2, %v83_v13 }
 0x1b3   :  { %v145_v15 = vpop.f32.mrb[0].mxu1 }
 0x1b4   :  { %v146_v16 = vadd.f32 %v159_v14, %v145_v15  ;;  %v180_v17 = vpop.f32.mrb[1].mxu1 }
 0x1b5   :  { %v148_v18 = vpop.f32.mrb[2].mxu1 }
 0x1b6   :  { %151 = vst.msk [vmem:[%s247_s5] sm:$0xff] %vm38_vm1, %v146_v16  ;;  %v181_v19 = vpop.f32.mrb[3].mxu1 }

// kernel: enhanced_actor_forward.3
= control target key start
LH: loop header
LB: loop body
LE: loop exit
PB: predicated region body
PF: predicated region fallthrough
CT: control target
= control target key end

     0   :  { %v420_v0 = vmov 0.0   ;;  %vm421_vm0 = vmmov 0   ;;  %vm51_vm1 = vcmask 130048   ;;  %vm193_vm2 = vcmask 523264   ;;  %s549_s3 = inlined_call_operand.vmem [shape: bf16[16,64], index: 3, kind: input, shape index: {}]   ;;  %s550_s2 = inlined_call_operand.vmem [shape: bf16[16,64], index: 2, kind: input, shape index: {}]   ;;  %s551_s1 = inlined_call_operand.vmem [shape: bf16[8,16], index: 1, kind: input, shape index: {}]   ;;  %s552_s0 = inlined_call_operand.vmem [shape: bf16[8,16], index: 0, kind: input, shape index: {}]   ;;  %s553_s5 = inlined_call_operand.vmem [shape: bf16[64,32], index: 5, kind: input, shape index: {}]   ;;  %s554_s7 = inlined_call_operand.vmem [shape: bf16[32,128], index: 7, kind: input, shape index: {}]   ;;  %s555_s4 = inlined_call_operand.vmem [shape: f32[1,64], index: 4, kind: input, shape index: {}]   ;;  %s556_s6 = inlined_call_operand.vmem [shape: f32[1,32], index: 6, kind: input, shape index: {}]   ;;  %s557_s8 = inlined_call_operand.vmem [shape: f32[1,128], index: 8, kind: input, shape index: {}]   ;;  %s558_s9 = inlined_call_operand.vmem [shape: f32[1,128], index: 9, kind: input, shape index: {}]   ;;  %s559_s10 = inlined_call_operand.vmem [shape: f32[1,128], index: 10, kind: input, shape index: {}]   ;;  %s560_s11 = inlined_call_operand.vmem [shape: f32[8,128], index: 11, kind: output, shape index: {}]  }
   0x1   :  { %376 = vmatprep.subr.bf16.mxu0 %v420_v0  ;;  %382 = vmatprep.subr.bf16.mxu1 %v420_v0  ;;  %v410_v1 = vld [vmem:[%s549_s3] sm:$0xff]   ;;  %v413_v6 = vld [vmem:[%s553_s5 + $0x8] sm:$0xff]   ;;  %v414_v7 = vld [vmem:[%s553_s5 + $0x10] sm:$0xff]   ;;  %vm262_vm3 = vcmask 261120   ;;  %v306_v32 = vlaneseq }
   0x2   :  { %v411_v2 = vld [vmem:[%s550_s2] sm:$0xff]   ;;  %378 = vmatprep.mubr.msk.bf16.mxu0 %vm421_vm0, %v420_v0  ;;  %384 = vmatprep.mubr.msk.bf16.mxu1 %vm421_vm0, %v420_v0  ;;  %v415_v8 = vld [vmem:[%s553_s5 + $0x18] sm:$0xff]   ;;  %v417_v23 = vld [vmem:[%s554_s7 + $0x8] sm:$0xff]  }
   0x3   :  { %377 = vmatpush3.bf16.msra.mxu0 %v410_v1  ;;  %v42_v3 = vld [vmem:[%s551_s1] sm:$0xf]  ;;  %383 = vmatpush3.bf16.msra.mxu1 %v411_v2  ;;  %v307_v33 = vand.u32 127, %v306_v32 }
   0x4   :  { %v39_v4 = vld [vmem:[%s552_s0] sm:$0xf]  ;;  %388 = vmatprep.subr.bf16.mxu0 %v420_v0  ;;  %400 = vmatprep.subr.bf16.mxu1 %v420_v0 }
   0x5   :  { %v412_v5 = vld [vmem:[%s553_s5] sm:$0xff]   ;;  %vm308_vm4 = vcmp.lt.s32.totalorder %v307_v33, 32 }
   0x6   :  { %379 = vmatmul.mubr.msk.bf16.vlgmr.msra.gmra.mrb[0].mxu0 %vm51_vm1, %v42_v3  ;;  %385 = vmatmul.mubr.msk.bf16.vlgmr.msra.gmra.mrb[0].mxu1 %vm51_vm1, %v39_v4  ;;  %v416_v9 = vld [vmem:[%s554_s7] sm:$0xff]   ;;  %v361_v36 = vsel %vm308_vm4, 1.0, %v420_v0 }
   0x7   :  { %389 = vmatpush3.bf16.msra.mxu0 %v412_v5  ;;  %396 = vmatprep.mubr.msk.bf16.mxu0 %vm421_vm0, %v420_v0  ;;  %v350_v12 = vld [vmem:[%s555_s4] ss:$0 sm:$0xff] }
   0x8   :  { %390 = vmatprep.subr.bf16.mxu0 %v420_v0  ;;  %404 = vmatprep.mubr.msk.bf16.mxu1 %vm421_vm0, %v420_v0  ;;  %v351_v24 = vld [vmem:[%s556_s6] ss:$0 sm:$0xff] }
   0x9   :  { %401 = vmatpush3.bf16.msra.mxu1 %v416_v9  ;;  %v357_v34 = vld [vmem:[%s557_s8] ss:$0 sm:$0xff] }
   0xa   :  { %402 = vmatprep.subr.bf16.mxu1 %v420_v0  ;;  %v362_v51 = vld [vmem:[%s558_s9] ss:$0 sm:$0xff] }
   0xb   :  { %391 = vmatpush3.bf16.msra.mxu0 %v413_v6  ;;  %v363_v53 = vld [vmem:[%s559_s10] ss:$0 sm:$0xff] }
   0xc   :  { %392 = vmatprep.subr.bf16.mxu0 %v420_v0 }
   0xd   :  { %403 = vmatpush3.bf16.msra.mxu1 %v417_v23 }
   0xf   :  { %393 = vmatpush3.bf16.msra.mxu0 %v414_v7 }
  0x10   :  { %394 = vmatprep.subr.bf16.mxu0 %v420_v0 }
  0x13   :  { %395 = vmatpush3.bf16.msra.mxu0 %v415_v8 }
  0xd9   :  { %v89_v10 = vpop.f32.mrb[0].mxu0  ;;  %v138_v11 = vpop.f32.mrb[0].mxu1 }
  0xda   :  { %v380_v13 = vpop.f32.mrb[1].mxu0  ;;  %v139_v14 = vadd.f32 %v138_v11, %v89_v10  ;;  %v386_v15 = vpop.f32.mrb[1].mxu1 }
  0xdb   :  { %v92_v16 = vpop.f32.mrb[2].mxu0  ;;  %v141_v17 = vpop.f32.mrb[2].mxu1 }
  0xdc   :  { %v381_v18 = vpop.f32.mrb[3].mxu0  ;;  %v151_v19 = vadd.f32 %v350_v12, %v139_v14  ;;  %v387_v20 = vpop.f32.mrb[3].mxu1 }
  0xde   :  { %v152_v21 = vmax.f32 %v151_v19, 0.0 }
  0xe0   :  { %v153_v22 = vpack.c.bf16 %v152_v21, %v152_v21 }
  0xe2   :  { %397 = vmatmul.mubr.msk.bf16.vlgmr.msra.gmra.mrb[4].mxu0 %vm193_vm2, %v153_v22 }
 0x1b5   :  { %v231_v25 = vpop.f32.mrb[4].mxu0 }
 0x1b6   :  { %v232_v26 = vadd.f32 %v351_v24, %v231_v25  ;;  %v398_v27 = vpop.f32.mrb[5].mxu0 }
 0x1b7   :  { %v234_v28 = vpop.f32.mrb[6].mxu0 }
 0x1b8   :  { %v237_v29 = vmax.f32 %v232_v26, 0.0  ;;  %v399_v30 = vpop.f32.mrb[7].mxu0 }
 0x1ba   :  { %v238_v31 = vpack.c.bf16 %v237_v29, %v237_v29 }
 0x1bc   :  { %405 = vmatmul.mubr.msk.bf16.vlgmr.msra.gmra.mrb[4].mxu1 %vm262_vm3, %v238_v31 }
 0x28f   :  { %v300_v35 = vpop.f32.mrb[4].mxu1 }
 0x290   :  { %v301_v37 = vadd.f32 %v357_v34, %v300_v35  ;;  %v406_v38 = vpop.f32.mrb[5].mxu1 }
 0x291   :  { %v303_v39 = vpop.f32.mrb[6].mxu1 }
 0x292   :  { %v407_v40 = vpop.f32.mrb[7].mxu1  ;;  %v311_v41 = vmul.f32 %v361_v36, %v301_v37 }
 0x294   :  { %312 = vadd.xlane.f32.xlu0 %v311_v41 }
 0x321   :  { %v313_v42 = vpop.xlane.xlu0 %312 }
 0x322   :  { %v314_v43 = vmul.f32 0.03125, %v313_v42 }
 0x324   :  { %v315_v44 = vsub.f32 %v301_v37, %v314_v43 }
 0x326   :  { %v316_v45 = vmul.f32 %v315_v44, %v315_v44 }
 0x328   :  { %v317_v46 = vmul.f32 %v361_v36, %v316_v45 }
 0x32a   :  { %318 = vadd.xlane.f32.xlu0 %v317_v46 }
 0x3b7   :  { %v319_v47 = vpop.xlane.xlu0 %318 }
 0x3b8   :  { %v320_v48 = vmul.f32 0.03125, %v319_v47 }
 0x3ba   :  { %v321_v49 = vadd.f32 1e-05, %v320_v48 }
 0x3bc   :  { %418 = vrsqrt.f32 %v321_v49 }
 0x3c6   :  { %v419_v50 = vpop.eup %418 }
 0x3c7   :  { %v323_v52 = vmul.f32 %v419_v50, %v315_v44 }
 0x3c9   :  { %v331_v54 = vmul.f32 %v362_v51, %v323_v52 }
 0x3cb   :  { %v339_v55 = vadd.f32 %v363_v53, %v331_v54 }
 0x3cd   :  { %v340_v56 = vsel %vm308_vm4, %v339_v55, %v301_v37 }
 0x3ce   :  { %341 = vst [vmem:[%s560_s11] sm:$0xff] %v340_v56 }

</bundles_post_ra>
